<compile_context>
chip_gen: v5e
topology: v5e:2x2
jax: 0.10.0
libtpu: 0.0.40
codegen_flags: <defaults>
</compile_context>

<pallas_src>
import functools

import jax
import jax.numpy as jnp
from jax.experimental import pallas as pl
from jax.experimental.pallas import tpu as pltpu


_LANES = 128  # VMEM minor-dim granularity: narrow arrays lane-pad to 128.


def _actor_kernel(state_ref, w1_ref, b1_ref, w2_ref, b2_ref, out_ref, *,
                  precision):
    """relu(x @ w1 + b1) @ w2 + b2 -> row softmax, entirely in VMEM."""
    # Cast activations to the weight dtype in-kernel (no-op for f32) so the
    # MXU sees a uniform operand pair; accumulation is always f32.  Casting
    # here (not in the wrapper) avoids an extra XLA pass over the state stream.
    x = state_ref[...].astype(w1_ref.dtype)
    h = jnp.dot(x, w1_ref[...], precision=precision,
                preferred_element_type=jnp.float32)
    h = jnp.maximum(h + b1_ref[...], 0.0)                       # bias + ReLU, f32

    logits = jnp.dot(h.astype(w2_ref.dtype), w2_ref[...], precision=precision,
                     preferred_element_type=jnp.float32)
    logits = logits + b2_ref[...]                               # (TB, A), f32

    # Numerically stable softmax over the action axis with an EXACT divide
    # (pl.reciprocal(approx=True) broke the normalization tolerance; exactness
    # is free here since the kernel is memory-bound, not VPU/EUP-bound).
    m = jnp.max(logits, axis=-1, keepdims=True)
    e = jnp.exp(logits - m)
    denom = jnp.sum(e, axis=-1, keepdims=True)
    out_ref[...] = (e / denom).astype(out_ref.dtype)


def _padded_row_bytes(ncols, itemsize):
    # Bytes one batch row of an (rows, ncols) buffer occupies in VMEM: the
    # minor dim is lane-padded to a multiple of 128 regardless of ncols.
    return pl.cdiv(max(int(ncols), 1), _LANES) * _LANES * itemsize


def _derive_batch_tile(S, H, A, state_itemsize, out_itemsize, vmem_budget_bytes):
    """Largest 8-aligned batch tile whose padded VMEM footprint fits the budget."""
    row_bytes = (
        2 * _padded_row_bytes(S, state_itemsize)    # double-buffered state blocks
        + 2 * _padded_row_bytes(A, out_itemsize)    # double-buffered output blocks
        + _padded_row_bytes(H, 4)                   # h = relu(x @ w1 + b1), f32
        + 3 * _padded_row_bytes(A, 4)               # logits, e, elementwise temps
        + 2 * _padded_row_bytes(1, 4)               # m, denom reduction results
    )
    return max(8, (vmem_budget_bytes // row_bytes) // 8 * 8)


def actor_forward(state, w1, b1, w2, b2, *,
                  block_b=None,
                  matmul_dtype=None,
                  out_dtype=jnp.float32,
                  vmem_budget_bytes=24 * 1024 * 1024,
                  vmem_limit_bytes=32 * 1024 * 1024,
                  precision=None):
    """Actor forward pass (linear -> relu -> linear -> softmax) on TPU.

    block_b:            explicit batch tile (rows); if None it is derived from
                        vmem_budget_bytes (recommended).
    matmul_dtype:       e.g. jnp.bfloat16 — casts only the tiny weights in the
                        wrapper; activations are cast in-kernel.  For the full
                        bandwidth win pass `state` already in this dtype
                        (bf16 MXU path is valid on v5e, v6e and v7x).
    out_dtype:          output dtype; bf16 halves the (B, A) store stream.
    vmem_budget_bytes:  VMEM the kernel may plan on (keep <= ~0.75 *
                        vmem_limit_bytes).  Defaults are safe on v5e/v6e/v7x;
                        raise both on v5e/v6e (128 MiB physical VMEM) for
                        bigger tiles.
    precision:          optional lax.Precision for the matmuls (e.g. HIGHEST
                        for closer-to-f32 semantics).
    """
    B, S = state.shape
    H = w1.shape[1]
    A = w2.shape[1]

    if matmul_dtype is not None:
        # Do NOT cast `state` here: a wrapper-side astype is a separate XLA
        # pass (reads B*S*4, writes B*S*2 bytes) that adds HBM traffic instead
        # of halving it.  Only the tiny weights are cast.
        w1 = w1.astype(matmul_dtype)
        w2 = w2.astype(matmul_dtype)

    b1_2d = b1.reshape(1, H).astype(jnp.float32)
    b2_2d = b2.reshape(1, A).astype(jnp.float32)

    out_itemsize = jnp.dtype(out_dtype).itemsize

    # ---- batch tile / grid selection -------------------------------------
    if block_b is None:
        block_b = _derive_batch_tile(S, H, A, state.dtype.itemsize,
                                     out_itemsize, vmem_budget_bytes)
    if B <= block_b:
        tb = B
        if B > 4096:
            # Keep >= 2 grid steps so the "parallel" batch axis can shard
            # across v7x's 2 TensorCores (harmless on 1-TC v5e/v6e).
            tb = pl.cdiv(pl.cdiv(B, 2), 8) * 8
    else:
        tb = max(8, (block_b // 8) * 8)
    grid = (pl.cdiv(B, tb),)
    # Note: when B % tb != 0 the padded rows of the last block run softmax on
    # uninitialized VMEM; those lanes are masked on store, so results are
    # correct (only a concern for NaN-scanning debug tools).

    # Advisory cost hint so XLA schedules this small custom call sensibly.
    bytes_accessed = (
        state.size * state.dtype.itemsize
        + w1.size * w1.dtype.itemsize + w2.size * w2.dtype.itemsize
        + b1_2d.size * 4 + b2_2d.size * 4
        + B * A * out_itemsize
    )
    cost = pl.CostEstimate(
        flops=2 * B * (S * H + H * A),
        transcendentals=B * A,
        bytes_accessed=bytes_accessed,
    )

    kernel = functools.partial(_actor_kernel, precision=precision)

    return pl.pallas_call(
        kernel,
        out_shape=jax.ShapeDtypeStruct((B, A), out_dtype),
        grid=grid,
        in_specs=[
            pl.BlockSpec((tb, S), lambda i: (i, 0)),   # streamed batch tiles
            pl.BlockSpec((S, H), lambda i: (0, 0)),    # weights stay VMEM-resident
            pl.BlockSpec((1, H), lambda i: (0, 0)),
            pl.BlockSpec((H, A), lambda i: (0, 0)),
            pl.BlockSpec((1, A), lambda i: (0, 0)),
        ],
        out_specs=pl.BlockSpec((tb, A), lambda i: (i, 0)),
        compiler_params=pltpu.CompilerParams(
            dimension_semantics=("parallel",),
            vmem_limit_bytes=vmem_limit_bytes,
        ),
        cost_estimate=cost,
    )(state, w1, b1_2d, w2, b2_2d)


def reference_forward(state, w1, b1, w2, b2):
    state = state.astype(jnp.float32)
    h = jnp.maximum(state @ w1 + b1, 0.0)
    logits = h @ w2 + b2
    return jax.nn.softmax(logits, axis=1)


if __name__ == "__main__":
    # Small shapes consistent with the module: state_num=16, action_num=8, batch=4.
    B, STATE_NUM, HIDDEN, ACTION_NUM = 4, 16, 20, 8

    key = jax.random.PRNGKey(0)
    k_state, k_w1, k_b1, k_w2, k_b2 = jax.random.split(key, 5)

    # Deterministic parameter init (mimicking nn.Linear's uniform fan-in init).
    bound1 = 1.0 / (STATE_NUM ** 0.5)
    bound2 = 1.0 / (HIDDEN ** 0.5)
    w1 = jax.random.uniform(k_w1, (STATE_NUM, HIDDEN), jnp.float32, -bound1, bound1)
    b1 = jax.random.uniform(k_b1, (HIDDEN,), jnp.float32, -bound1, bound1)
    w2 = jax.random.uniform(k_w2, (HIDDEN, ACTION_NUM), jnp.float32, -bound2, bound2)
    b2 = jax.random.uniform(k_b2, (ACTION_NUM,), jnp.float32, -bound2, bound2)

    state = jax.random.normal(k_state, (B, STATE_NUM), jnp.float32)

    # 1) Small-batch path (single block, grid=(1,)).
    actions = actor_forward(state, w1, b1, w2, b2)
    actions = jax.block_until_ready(actions)
    expected = reference_forward(state, w1, b1, w2, b2)
    assert actions.shape == (B, ACTION_NUM)
    assert jnp.allclose(actions, expected, atol=2e-3, rtol=2e-3)
    assert jnp.allclose(jnp.sum(actions, axis=1), 1.0, atol=1e-3)

    # 2) Larger batch exercises the derived-tile, pipelined (grid >= 2) path.
    B2 = 8192
    state_big = jax.random.normal(jax.random.PRNGKey(1), (B2, STATE_NUM), jnp.float32)
    expected_big = reference_forward(state_big, w1, b1, w2, b2)

    big = actor_forward(state_big, w1, b1, w2, b2)
    big = jax.block_until_ready(big)
    assert big.shape == (B2, ACTION_NUM)
    assert jnp.allclose(big, expected_big, atol=2e-3, rtol=2e-3)
    assert jnp.allclose(jnp.sum(big, axis=1), 1.0, atol=1e-3)

    # 3) bf16 end-to-end bandwidth path (bf16 state in HBM, bf16 weights and
    #    output; f32 accumulation / softmax inside), loose tolerance.
    big_bf16 = actor_forward(state_big.astype(jnp.bfloat16), w1, b1, w2, b2,
                             matmul_dtype=jnp.bfloat16, out_dtype=jnp.bfloat16)
    big_bf16 = jax.block_until_ready(big_bf16)
    assert big_bf16.dtype == jnp.bfloat16
    assert jnp.allclose(big_bf16.astype(jnp.float32), expected_big,
                        atol=3e-2, rtol=3e-2)

    print("KERNEL_OK")
</pallas_src>

<mosaic_0001>
module attributes {stable_mosaic.version = 11 : i64} {
  func.func @_actor_kernel(%arg0: i32, %arg1: memref<4x16xf32, #tpu.memory_space<vmem>>, %arg2: memref<16x20xf32, #tpu.memory_space<vmem>>, %arg3: memref<1x20xf32, #tpu.memory_space<vmem>>, %arg4: memref<20x8xf32, #tpu.memory_space<vmem>>, %arg5: memref<1x8xf32, #tpu.memory_space<vmem>>, %arg6: memref<4x8xf32, #tpu.memory_space<vmem>>) attributes {dimension_semantics = [#tpu.dimension_semantics<parallel>], iteration_bounds = array<i64: 1>, scalar_prefetch = 0 : i64, scratch_operands = 0 : i64, tpu.core_type = #tpu.core_type<tc>, window_params = [{transform_indices = @transform_0, window_bounds = array<i64: 4, 16>}, {pipeline_mode = #tpu.pipeline_mode<synchronous>, transform_indices = @transform_1, window_bounds = array<i64: 16, 20>}, {pipeline_mode = #tpu.pipeline_mode<synchronous>, transform_indices = @transform_2, window_bounds = array<i64: 1, 20>}, {pipeline_mode = #tpu.pipeline_mode<synchronous>, transform_indices = @transform_3, window_bounds = array<i64: 20, 8>}, {pipeline_mode = #tpu.pipeline_mode<synchronous>, transform_indices = @transform_4, window_bounds = array<i64: 1, 8>}, {transform_indices = @transform_5, window_bounds = array<i64: 4, 8>}]} {
    %c0 = arith.constant 0 : index
    %c0_0 = arith.constant 0 : index
    %0 = vector.load %arg1[%c0, %c0_0] : memref<4x16xf32, #tpu.memory_space<vmem>>, vector<4x16xf32>
    %c0_1 = arith.constant 0 : index
    %c0_2 = arith.constant 0 : index
    %1 = vector.load %arg2[%c0_1, %c0_2] : memref<16x20xf32, #tpu.memory_space<vmem>>, vector<16x20xf32>
    %cst = arith.constant dense<0.000000e+00> : vector<4x20xf32>
    %2 = tpu.matmul %0, %1, %cst {dimension_numbers = #tpu.dot_dimension_numbers<[1], [0], [0], [1], [0, 0, 1, 1], [], []>} : vector<4x16xf32>, vector<16x20xf32>, vector<4x20xf32> -> vector<4x20xf32>
    %c0_3 = arith.constant 0 : index
    %c0_4 = arith.constant 0 : index
    %3 = vector.load %arg3[%c0_3, %c0_4] : memref<1x20xf32, #tpu.memory_space<vmem>>, vector<1x20xf32>
    %4 = vector.broadcast %3 : vector<1x20xf32> to vector<4x20xf32>
    %5 = arith.addf %2, %4 : vector<4x20xf32>
    %cst_5 = arith.constant 0.000000e+00 : f32
    %6 = vector.broadcast %cst_5 : f32 to vector<4x20xf32>
    %7 = arith.maximumf %5, %6 : vector<4x20xf32>
    %c0_6 = arith.constant 0 : index
    %c0_7 = arith.constant 0 : index
    %8 = vector.load %arg4[%c0_6, %c0_7] : memref<20x8xf32, #tpu.memory_space<vmem>>, vector<20x8xf32>
    %cst_8 = arith.constant dense<0.000000e+00> : vector<4x8xf32>
    %9 = tpu.matmul %7, %8, %cst_8 {dimension_numbers = #tpu.dot_dimension_numbers<[1], [0], [0], [1], [0, 0, 1, 1], [], []>} : vector<4x20xf32>, vector<20x8xf32>, vector<4x8xf32> -> vector<4x8xf32>
    %c0_9 = arith.constant 0 : index
    %c0_10 = arith.constant 0 : index
    %10 = vector.load %arg5[%c0_9, %c0_10] : memref<1x8xf32, #tpu.memory_space<vmem>>, vector<1x8xf32>
    %11 = vector.broadcast %10 : vector<1x8xf32> to vector<4x8xf32>
    %12 = arith.addf %9, %11 : vector<4x8xf32>
    %cst_11 = arith.constant dense<0xFF800000> : vector<4xf32>
    %13 = vector.multi_reduction <maximumf>, %12, %cst_11 [1] : vector<4x8xf32> to vector<4xf32>
    %14 = vector.shape_cast %13 : vector<4xf32> to vector<4x1xf32>
    %15 = vector.broadcast %14 : vector<4x1xf32> to vector<4x8xf32>
    %16 = arith.subf %12, %15 : vector<4x8xf32>
    %17 = math.exp %16 : vector<4x8xf32>
    %cst_12 = arith.constant dense<0.000000e+00> : vector<4xf32>
    %18 = vector.multi_reduction <add>, %17, %cst_12 [1] : vector<4x8xf32> to vector<4xf32>
    %19 = vector.shape_cast %18 : vector<4xf32> to vector<4x1xf32>
    %20 = vector.broadcast %19 : vector<4x1xf32> to vector<4x8xf32>
    %21 = arith.divf %17, %20 : vector<4x8xf32>
    %c0_13 = arith.constant 0 : index
    %c0_14 = arith.constant 0 : index
    %22 = vector.load %arg6[%c0_13, %c0_14] : memref<4x8xf32, #tpu.memory_space<vmem>>, vector<4x8xf32>
    tpu.vector_store %arg6[%c0_13, %c0_14], %21 {strides = array<i32>} : memref<4x8xf32, #tpu.memory_space<vmem>>, vector<4x8xf32>,
    return
  }
  func.func @transform_0(%arg0: i32) -> (i32, i32) {
    %c0_i32 = arith.constant 0 : i32
    %c0_i32_0 = arith.constant 0 : i32
    return %arg0, %c0_i32 : i32, i32
  }
  func.func @transform_1(%arg0: i32) -> (i32, i32) {
    %c0_i32 = arith.constant 0 : i32
    %c0_i32_0 = arith.constant 0 : i32
    %c0_i32_1 = arith.constant 0 : i32
    return %c0_i32, %c0_i32_0 : i32, i32
  }
  func.func @transform_2(%arg0: i32) -> (i32, i32) {
    %c0_i32 = arith.constant 0 : i32
    %c0_i32_0 = arith.constant 0 : i32
    %c0_i32_1 = arith.constant 0 : i32
    return %c0_i32, %c0_i32_0 : i32, i32
  }
  func.func @transform_3(%arg0: i32) -> (i32, i32) {
    %c0_i32 = arith.constant 0 : i32
    %c0_i32_0 = arith.constant 0 : i32
    %c0_i32_1 = arith.constant 0 : i32
    return %c0_i32, %c0_i32_0 : i32, i32
  }
  func.func @transform_4(%arg0: i32) -> (i32, i32) {
    %c0_i32 = arith.constant 0 : i32
    %c0_i32_0 = arith.constant 0 : i32
    %c0_i32_1 = arith.constant 0 : i32
    return %c0_i32, %c0_i32_0 : i32, i32
  }
  func.func @transform_5(%arg0: i32) -> (i32, i32) {
    %c0_i32 = arith.constant 0 : i32
    %c0_i32_0 = arith.constant 0 : i32
    return %arg0, %c0_i32 : i32, i32
  }
}

</mosaic_0001>

<bundles_post_ra>
// kernel: tpu_custom_call.1
= control target key start
LH: loop header
LB: loop body
LE: loop exit
PB: predicated region body
PF: predicated region fallthrough
CT: control target
= control target key end

     0   :  { %vm28_vm0 = vcmask 130048   ;;  %s227_s0 = inlined_call_operand.vmem [shape: f32[4,16], index: 0, kind: input, shape index: {}]   ;;  %s228_s1 = inlined_call_operand.vmem [shape: f32[16,20], index: 1, kind: input, shape index: {}]   ;;  %s229_s2 = inlined_call_operand.vmem [shape: f32[1,20], index: 2, kind: input, shape index: {}]   ;;  %s230_s3 = inlined_call_operand.vmem [shape: f32[20,8], index: 3, kind: input, shape index: {}]   ;;  %s231_s4 = inlined_call_operand.vmem [shape: f32[1,8], index: 4, kind: input, shape index: {}]   ;;  %s232_s5 = inlined_call_operand.hbm [shape: f32[4,8], index: 5, kind: output, shape index: {}]  }
   0x1   :  { %v23_v0 = vld [vmem:[%s228_s1 + $0x8] sm:$0xff]  ;;  %v22_v1 = vld [vmem:[%s228_s1] sm:$0xff] }
   0x2   :  { %v21_v2 = vld [vmem:[%s227_s0] sm:$0xf]  ;;  %46 = vmatpush.msra.mxu0 %v23_v0 }
   0x3   :  { %10 = vsyncpa [#allocation3], 0  ;;  %v55_v3 = vld [vmem:[%s230_s3 + $0x10] sm:$0xf]  ;;  %vm64_vm1 = vcmask 1043456   ;;  %v54_v4 = vld [vmem:[%s230_s3 + $0x8] sm:$0xff] }
   0x4   :  { %47 = vmatpush.msra.mxu0 %v22_v1  ;;  %131 = vmatpush.msk.msra.mxu1 %vm64_vm1, %v55_v3  ;;  %v53_v5 = vld [vmem:[%s230_s3] sm:$0xff]  ;;  %vm60_vm2 = vcmask 162816   ;;  %vm88_vm3 = vcmask 60416   ;;  %s121_s8 = sshll.u32 %s232_s5, 4  ;;  %s122_s8 = int_to_ptr.hbm [resolvable:$true] %s121_s8 }
   0x5   :  { %130 = vmatmul.msk.f32.vlgmr.msra.gmra.mxu0 %vm28_vm0, %v21_v2  ;;  %v134_v6 = vld [vmem:[%s229_s2] ss:$0 sm:$0xff]  ;;  %s166_s2 = smov [#allocation2]  }
   0x6   :  { %82 = vmatpush.msra.mxu1 %v54_v4  ;;  %v135_v10 = vld [vmem:[%s231_s4] ss:$0 sm:$0xff]  ;;  %s119_s3 = sshll.u32 %s166_s2, 4  ;;  %s120_s3 = int_to_ptr.vmem [resolvable:$true] %s119_s3 }
   0x8   :  { %83 = vmatpush.msra.mxu1 %v53_v5 }
  0x82   :  { %v49_v7 = vpop.f32.mrf.mxu0 }
  0x83   :  { %v50_v8 = vadd.f32 %v134_v6, %v49_v7 }
  0x85   :  { %v52_v9 = vmax.f32 %v50_v8, 0.0 }
  0x87   :  { %132 = vmatmul.msk.f32.vlgmr.msra.gmra.mxu1 %vm60_vm2, %v52_v9 }
 0x104   :  { %v85_v11 = vpop.f32.mrf.mxu1 }
 0x105   :  { %v86_v12 = vadd.f32 %v135_v10, %v85_v11 }
 0x107   :  { %v89_v13 = vsel %vm88_vm3, %v86_v12, -inf }
 0x108   :  { %90 = vmax.xlane.f32.xlu0 %v89_v13 }
 0x17b   :  { %v91_v14 = vpop.xlane.xlu0 %90 }
 0x17c   :  { %v92_v15 = vsub.f32 %v86_v12, %v91_v14 }
 0x17e   :  { %v93_v16 = vmul.f32 1.442695, %v92_v15 }
 0x180   :  { %136 = vpow2.f32 %v93_v16 }
 0x186   :  { %v137_v17 = vpop.eup %136 }
 0x187   :  { %v95_v18 = vsel %vm88_vm3, %v137_v17, 0.0 }
 0x188   :  { %96 = vadd.xlane.f32.xlu0 %v95_v18 }
 0x1fb   :  { %v97_v19 = vpop.xlane.xlu0 %96 }
 0x1fc   :  { %138 = vrcp.f32 %v97_v19  ;;  %v109_v23 = vand.u32 2147483648, %v97_v19  ;;  %v107_v25 = vand.u32 2147483647, %v97_v19  ;;  %vm103_vm5 = vweird.f32 %v97_v19 }
 0x1fe   :  { %v110_v27 = vor.u32 1.1754944e-38, %v109_v23  ;;  %vm108_vm7 = vcmp.eq.f32.partialorder %v107_v25, 8.507059e+37 }
 0x202   :  { %v139_v20 = vpop.eup %138 }
 0x203   :  { %v99_v21 = vmul.f32 %v139_v20, %v97_v19  ;;  %vm104_vm4 = vweird.f32 %v139_v20 }
 0x204   :  { %vm105_vm6 = vmor %vm103_vm5, %vm104_vm4 }
 0x205   :  { %v100_v22 = vsub.f32 1.0, %v99_v21 }
 0x207   :  { %v101_v24 = vmul.f32 %v139_v20, %v100_v22 }
 0x209   :  { %v102_v26 = vadd.f32 %v139_v20, %v101_v24 }
 0x20b   :  { %v106_v28 = vsel %vm105_vm6, %v139_v20, %v102_v26 }
 0x20c   :  { %v111_v29 = vsel %vm108_vm7, %v110_v27, %v106_v28 }
 0x20d   :  { %v112_v30 = vmul.f32 %v137_v17, %v111_v29 }
 0x20f   :  { %113 = vst.msk [vmem:[#allocation2] sm:$0xf] %vm88_vm3, %v112_v30 }
 0x210   :  { %124 = dma.vmem_to_hbm [thread:$0]  %s120_s3, 64, %s122_s8, [#allocation3]  }
 0x211   :  { %164 = dma.done.wait [#allocation3], 64  }
 0x212   :  { %165 = vsyncadd [#allocation3], 4294967232 }
 0x213   :  { %129 = vsyncpa [#allocation3], 1 }

</bundles_post_ra>
